<compile_context>
chip_gen: v5e
topology: v5e:2x2
jax: 0.10.0
libtpu: 0.0.40
codegen_flags: <defaults>
</compile_context>

<pallas_src>
import functools
import math

import jax
import jax.numpy as jnp
from jax.experimental import pallas as pl
from jax.experimental.pallas import tpu as pltpu


def _round_up(x: int, m: int) -> int:
    return (x + m - 1) // m * m


def _lane_round(d: int, align: int) -> int:
    """Pad a lane dim to a multiple of 128, and to `align` once it is >= align."""
    r = _round_up(d, 128)
    if r >= align:
        r = _round_up(d, align)
    return r


@functools.lru_cache(maxsize=None)
def _tpu_config():
    """One-time hardware probe -> tiling/VMEM policy (pure-Python ints)."""
    vmem_cap = None
    try:
        info = pltpu.get_tpu_info()
        vmem_cap = int(getattr(info, "vmem_capacity_bytes", 0)) or None
    except Exception:
        vmem_cap = None
    kind = ""
    try:
        kind = jax.devices()[0].device_kind.lower()
    except Exception:
        pass

    if vmem_cap is not None and vmem_cap <= 80 * 1024 * 1024:
        # v7x-class: 64 MiB VMEM per TC, 2 TensorCores per chip.
        return {"vmem_limit": 48 << 20, "max_tm": 512, "max_th": 512,
                "min_row_tiles": 2, "mxu_align": 256}
    if "v5" in kind:
        # v5e: MXU-bound already at intensity ~512; keep moderate tiles.
        return {"vmem_limit": 64 << 20, "max_tm": 512, "max_th": 512,
                "min_row_tiles": 1, "mxu_align": 128}
    # v6e-class (or unknown 128-MiB part): HBM-bound on weight streaming.
    return {"vmem_limit": 100 << 20, "max_tm": 1024, "max_th": 1024,
            "min_row_tiles": 1, "mxu_align": 256}


def _pick_tm(M: int, max_tm: int, min_row_tiles: int) -> int:
    """Row-tile size: multiple of 8, minimal M-padding waste, >= min_row_tiles tiles."""
    M8 = _round_up(M, 8)
    if min_row_tiles > 1 and M8 > 8:
        max_tm = min(max_tm, _round_up(-(-M8 // min_row_tiles), 8))
    if M8 <= max_tm:
        return M8                       # single ragged-free tile, zero waste
    cands = sorted({c for c in (1024, 896, 768, 640, 512, 448, 384, 320, 256, 192, 128)
                    if c <= max_tm} | {max_tm}, reverse=True)
    best_tm, best_waste = None, None
    for tm in cands:
        waste = _round_up(M8, tm) - M8
        if best_waste is None or waste < best_waste:
            best_tm, best_waste = tm, waste
    return best_tm


def _fit_tiles(M, E_pad, H, cfg, itemsize, use_scratch):
    """Pick (tm, th, x_buffers) that fit the per-generation VMEM budget."""
    budget = int(cfg["vmem_limit"] * 0.9)
    tm = _pick_tm(M, cfg["max_tm"], cfg["min_row_tiles"])
    th = min(cfg["max_th"], _lane_round(H, cfg["mxu_align"]))
    x_buffers = 2

    def usage(tm_, th_, xb_):
        return (xb_ * tm_ * E_pad * itemsize                 # x tile
                + 2 * (E_pad * th_ + th_) * itemsize         # w1 + b1 (double-buffered)
                + 2 * (th_ * E_pad + E_pad) * itemsize       # w2 + b2 (double-buffered)
                + 2 * tm_ * E_pad * itemsize                 # output tile
                + (tm_ * E_pad * 4 if use_scratch else 0))   # f32 accumulator scratch

    while usage(tm, th, x_buffers) > budget:
        if th > 256:
            th //= 2
        elif x_buffers == 2:
            x_buffers = 1          # x's block index is constant across the inner h axis
        elif tm > 128:
            tm = max(128, _round_up(tm // 2, 8))
        elif th > 128:
            th = 128
        else:
            break
    return tm, th, x_buffers


def _ffn_kernel(x_ref, w1_ref, b1_ref, w2_ref, b2_ref, o_ref, *acc):
    # x_ref:   (tm, E_pad)   token tile
    # w1_ref:  (E_pad, th)   fc1 weight tile (transposed vs PyTorch)
    # b1_ref:  (1, th)       fc1 bias tile
    # w2_ref:  (th, E_pad)   fc2 weight tile (transposed vs PyTorch)
    # b2_ref:  (1, E_pad)    fc2 bias (block index constant -> resident)
    # o_ref:   (tm, E_pad)   output tile (resident across the h axis)
    # acc:     () for f32 outputs (o_ref itself is the accumulator),
    #          (acc_ref,) f32 VMEM scratch otherwise.
    acc_ref = acc[0] if acc else o_ref
    h_idx = pl.program_id(1)

    @pl.when(h_idx == 0)
    def _():
        acc_ref[...] = jnp.zeros_like(acc_ref)

    # fc1 tile + bias + ReLU.  b1 is tiled along H so each hidden unit gets its
    # bias exactly once; ReLU is elementwise, so per-H-tile application matches
    # the reference ordering.
    h = jnp.dot(x_ref[...], w1_ref[...], preferred_element_type=jnp.float32)
    h = jnp.maximum(h + b1_ref[...], 0.0)

    # dropout: identity (eval-mode semantics)
    # TODO(synk): training-mode dropout via pltpu.prng_seed + stateful_bernoulli.

    # fc2 partial product, accumulated in f32.  h is cast back to the weight
    # dtype so bf16 weights stay on the fast MXU path (documented precision
    # trade-off; loosen tolerances for bf16 parity checks).
    acc_ref[...] += jnp.dot(h.astype(w2_ref.dtype), w2_ref[...],
                            preferred_element_type=jnp.float32)

    @pl.when(h_idx == pl.num_programs(1) - 1)
    def _():
        o_ref[...] = (acc_ref[...] + b2_ref[...]).astype(o_ref.dtype)


@functools.partial(jax.jit,
                   static_argnames=("tm", "th", "E_pad", "x_buffers", "vmem_limit"))
def _ffn_2d(x2d, w1, b1, w2, b2, *, tm, th, E_pad, x_buffers, vmem_limit):
    M, E = x2d.shape
    H = w1.shape[1]
    dtype = x2d.dtype
    M_pad = _round_up(M, tm)
    H_pad = _round_up(H, th)

    def pad2(a, r, c):
        # Skip the per-call HBM copy entirely when already aligned.
        # TODO(synk): for unaligned E/H, pad the weights once at parameter-init
        #             time instead of on every call.
        if a.shape == (r, c):
            return a
        return jnp.pad(a, ((0, r - a.shape[0]), (0, c - a.shape[1])))

    xp = pad2(x2d, M_pad, E_pad)
    w1p = pad2(w1, E_pad, H_pad)
    b1p = pad2(b1.reshape(1, H), 1, H_pad)
    w2p = pad2(w2, H_pad, E_pad)
    b2p = pad2(b2.reshape(1, E), 1, E_pad)

    n_row_tiles = M_pad // tm
    isz = jnp.dtype(dtype).itemsize
    cost = pl.CostEstimate(
        flops=4 * M_pad * E_pad * H_pad,
        transcendentals=0,
        bytes_accessed=(M_pad * E_pad * isz                                   # x read
                        + n_row_tiles * (w1p.size + b1p.size
                                         + w2p.size + b2p.size) * isz        # weights re-streamed per row tile
                        + M_pad * E_pad * isz),                               # output write
    )

    use_scratch = dtype != jnp.float32
    scratch = [pltpu.VMEM((tm, E_pad), jnp.float32)] if use_scratch else []

    if x_buffers == 2:
        x_spec = pl.BlockSpec((tm, E_pad), lambda i, h: (i, 0))
    else:
        # Single-buffer x when VMEM is tight: its block index doesn't change
        # across the inner (h) axis, so the second buffer buys almost nothing.
        x_spec = pl.BlockSpec((tm, E_pad), lambda i, h: (i, 0),
                              pipeline_mode=pl.Buffered(x_buffers))

    out2d = pl.pallas_call(
        _ffn_kernel,
        out_shape=jax.ShapeDtypeStruct((M_pad, E_pad), dtype),
        grid_spec=pltpu.PrefetchScalarGridSpec(
            num_scalar_prefetch=0,
            grid=(n_row_tiles, H_pad // th),
            in_specs=[
                x_spec,                                            # x tile
                pl.BlockSpec((E_pad, th), lambda i, h: (0, h)),    # w1 tile
                pl.BlockSpec((1, th),     lambda i, h: (0, h)),    # b1 tile
                pl.BlockSpec((th, E_pad), lambda i, h: (h, 0)),    # w2 tile
                pl.BlockSpec((1, E_pad),  lambda i, h: (0, 0)),    # b2 (resident)
            ],
            out_specs=pl.BlockSpec((tm, E_pad), lambda i, h: (i, 0)),
            scratch_shapes=scratch,
        ),
        compiler_params=pltpu.CompilerParams(
            dimension_semantics=("parallel", "arbitrary"),
            vmem_limit_bytes=vmem_limit,
        ),
        cost_estimate=cost,
    )(xp, w1p, b1p, w2p, b2p)

    return out2d[:M, :E]


def position_wise_ffn(x, w1, b1, w2, b2):
    """Position-wise FFN: relu(x @ w1 + b1) @ w2 + b2 (eval-mode dropout = identity).

    x: (..., E); w1: (E, H); b1: (H,); w2: (H, E); b2: (E,).
    Weights are stored transposed relative to PyTorch nn.Linear.weight.
    Accumulation is in f32 regardless of input dtype.
    """
    E = x.shape[-1]
    H = w1.shape[1]
    lead = x.shape[:-1]
    M = int(math.prod(lead)) if lead else 1

    cfg = _tpu_config()
    itemsize = jnp.dtype(x.dtype).itemsize
    use_scratch = x.dtype != jnp.float32
    E_pad = _lane_round(E, cfg["mxu_align"])
    tm, th, x_buffers = _fit_tiles(M, E_pad, H, cfg, itemsize, use_scratch)

    out2d = _ffn_2d(x.reshape(M, E), w1, b1, w2, b2,
                    tm=tm, th=th, E_pad=E_pad, x_buffers=x_buffers,
                    vmem_limit=cfg["vmem_limit"])
    return out2d.reshape(*lead, E)


def _init_linear(key, in_features, out_features, dtype=jnp.float32):
    """Deterministic init matching PyTorch nn.Linear default (U[-1/sqrt(in), 1/sqrt(in)]).
    Returns weight already transposed to (in_features, out_features)."""
    kw, kb = jax.random.split(key)
    bound = 1.0 / (in_features ** 0.5)
    w = jax.random.uniform(kw, (in_features, out_features), dtype,
                           minval=-bound, maxval=bound)
    b = jax.random.uniform(kb, (out_features,), dtype,
                           minval=-bound, maxval=bound)
    return w, b


if __name__ == "__main__":
    # Small shapes: batch=2, seq=8, embed_dim=32, hidden_dim=64
    B, S, E, Hid = 2, 8, 32, 64

    key = jax.random.PRNGKey(0)
    kx, k1, k2 = jax.random.split(key, 3)

    x = jax.random.normal(kx, (B, S, E), jnp.float32)
    w1, b1 = _init_linear(k1, E, Hid)     # fc1: E -> Hid
    w2, b2 = _init_linear(k2, Hid, E)     # fc2: Hid -> E

    out = position_wise_ffn(x, w1, b1, w2, b2)
    jax.block_until_ready(out)

    # Reference check in plain JAX (dropout is identity in eval mode).
    ref = jnp.maximum(x.reshape(-1, E) @ w1 + b1, 0.0) @ w2 + b2
    ref = ref.reshape(B, S, E)
    assert out.shape == (B, S, E)
    assert jnp.allclose(out, ref, atol=1e-4, rtol=1e-4), "mismatch vs reference"

    print("KERNEL_OK")
</pallas_src>

<mosaic_0001>
module attributes {stable_mosaic.version = 11 : i64} {
  func.func @_ffn_kernel(%arg0: i32, %arg1: i32, %arg2: memref<16x128xf32, #tpu.memory_space<vmem>>, %arg3: memref<128x128xf32, #tpu.memory_space<vmem>>, %arg4: memref<1x128xf32, #tpu.memory_space<vmem>>, %arg5: memref<128x128xf32, #tpu.memory_space<vmem>>, %arg6: memref<1x128xf32, #tpu.memory_space<vmem>>, %arg7: memref<16x128xf32, #tpu.memory_space<vmem>>) attributes {dimension_semantics = [#tpu.dimension_semantics<parallel>, #tpu.dimension_semantics<arbitrary>], iteration_bounds = array<i64: 1, 1>, scalar_prefetch = 0 : i64, scratch_operands = 0 : i64, tpu.core_type = #tpu.core_type<tc>, window_params = [{transform_indices = @transform_0, window_bounds = array<i64: 16, 128>}, {transform_indices = @transform_1, window_bounds = array<i64: 128, 128>}, {transform_indices = @transform_2, window_bounds = array<i64: 1, 128>}, {transform_indices = @transform_3, window_bounds = array<i64: 128, 128>}, {pipeline_mode = #tpu.pipeline_mode<synchronous>, transform_indices = @transform_4, window_bounds = array<i64: 1, 128>}, {transform_indices = @transform_5, window_bounds = array<i64: 16, 128>}]} {
    %c0_i32 = arith.constant 0 : i32
    %0 = arith.cmpi eq, %arg1, %c0_i32 : i32
    %1 = arith.extui %0 : i1 to i32
    %c0_i32_0 = arith.constant 0 : i32
    %2 = arith.cmpi ne, %1, %c0_i32_0 : i32
    scf.if %2 {
      %cst_16 = arith.constant 0.000000e+00 : f32
      %19 = vector.broadcast %cst_16 : f32 to vector<16x128xf32>
      %c0_17 = arith.constant 0 : index
      %c0_18 = arith.constant 0 : index
      %20 = vector.load %arg7[%c0_17, %c0_18] : memref<16x128xf32, #tpu.memory_space<vmem>>, vector<16x128xf32>
      tpu.vector_store %arg7[%c0_17, %c0_18], %19 {strides = array<i32>} : memref<16x128xf32, #tpu.memory_space<vmem>>, vector<16x128xf32>,
    } else {
    }
    %c0 = arith.constant 0 : index
    %c0_1 = arith.constant 0 : index
    %3 = vector.load %arg2[%c0, %c0_1] : memref<16x128xf32, #tpu.memory_space<vmem>>, vector<16x128xf32>
    %c0_2 = arith.constant 0 : index
    %c0_3 = arith.constant 0 : index
    %4 = vector.load %arg3[%c0_2, %c0_3] : memref<128x128xf32, #tpu.memory_space<vmem>>, vector<128x128xf32>
    %cst = arith.constant dense<0.000000e+00> : vector<16x128xf32>
    %5 = tpu.matmul %3, %4, %cst {dimension_numbers = #tpu.dot_dimension_numbers<[1], [0], [0], [1], [0, 0, 1, 1], [], []>} : vector<16x128xf32>, vector<128x128xf32>, vector<16x128xf32> -> vector<16x128xf32>
    %c0_4 = arith.constant 0 : index
    %c0_5 = arith.constant 0 : index
    %6 = vector.load %arg4[%c0_4, %c0_5] : memref<1x128xf32, #tpu.memory_space<vmem>>, vector<1x128xf32>
    %7 = vector.broadcast %6 : vector<1x128xf32> to vector<16x128xf32>
    %8 = arith.addf %5, %7 : vector<16x128xf32>
    %cst_6 = arith.constant 0.000000e+00 : f32
    %9 = vector.broadcast %cst_6 : f32 to vector<16x128xf32>
    %10 = arith.maximumf %8, %9 : vector<16x128xf32>
    %c0_7 = arith.constant 0 : index
    %c0_8 = arith.constant 0 : index
    %11 = vector.load %arg7[%c0_7, %c0_8] : memref<16x128xf32, #tpu.memory_space<vmem>>, vector<16x128xf32>
    %c0_9 = arith.constant 0 : index
    %c0_10 = arith.constant 0 : index
    %12 = vector.load %arg5[%c0_9, %c0_10] : memref<128x128xf32, #tpu.memory_space<vmem>>, vector<128x128xf32>
    %cst_11 = arith.constant dense<0.000000e+00> : vector<16x128xf32>
    %13 = tpu.matmul %10, %12, %cst_11 {dimension_numbers = #tpu.dot_dimension_numbers<[1], [0], [0], [1], [0, 0, 1, 1], [], []>} : vector<16x128xf32>, vector<128x128xf32>, vector<16x128xf32> -> vector<16x128xf32>
    %14 = arith.addf %11, %13 : vector<16x128xf32>
    %c0_12 = arith.constant 0 : index
    %c0_13 = arith.constant 0 : index
    %15 = vector.load %arg7[%c0_12, %c0_13] : memref<16x128xf32, #tpu.memory_space<vmem>>, vector<16x128xf32>
    tpu.vector_store %arg7[%c0_12, %c0_13], %14 {strides = array<i32>} : memref<16x128xf32, #tpu.memory_space<vmem>>, vector<16x128xf32>,
    %c0_i32_14 = arith.constant 0 : i32
    %16 = arith.cmpi eq, %arg1, %c0_i32_14 : i32
    %17 = arith.extui %16 : i1 to i32
    %c0_i32_15 = arith.constant 0 : i32
    %18 = arith.cmpi ne, %17, %c0_i32_15 : i32
    scf.if %18 {
      %c0_16 = arith.constant 0 : index
      %c0_17 = arith.constant 0 : index
      %19 = vector.load %arg7[%c0_16, %c0_17] : memref<16x128xf32, #tpu.memory_space<vmem>>, vector<16x128xf32>
      %c0_18 = arith.constant 0 : index
      %c0_19 = arith.constant 0 : index
      %20 = vector.load %arg6[%c0_18, %c0_19] : memref<1x128xf32, #tpu.memory_space<vmem>>, vector<1x128xf32>
      %21 = vector.broadcast %20 : vector<1x128xf32> to vector<16x128xf32>
      %22 = arith.addf %19, %21 : vector<16x128xf32>
      %c0_20 = arith.constant 0 : index
      %c0_21 = arith.constant 0 : index
      %23 = vector.load %arg7[%c0_20, %c0_21] : memref<16x128xf32, #tpu.memory_space<vmem>>, vector<16x128xf32>
      tpu.vector_store %arg7[%c0_20, %c0_21], %22 {strides = array<i32>} : memref<16x128xf32, #tpu.memory_space<vmem>>, vector<16x128xf32>,
    } else {
    }
    return
  }
  func.func @transform_0(%arg0: i32, %arg1: i32) -> (i32, i32) {
    %c0_i32 = arith.constant 0 : i32
    %c0_i32_0 = arith.constant 0 : i32
    return %arg0, %c0_i32 : i32, i32
  }
  func.func @transform_1(%arg0: i32, %arg1: i32) -> (i32, i32) {
    %c0_i32 = arith.constant 0 : i32
    %c0_i32_0 = arith.constant 0 : i32
    return %c0_i32, %arg1 : i32, i32
  }
  func.func @transform_2(%arg0: i32, %arg1: i32) -> (i32, i32) {
    %c0_i32 = arith.constant 0 : i32
    %c0_i32_0 = arith.constant 0 : i32
    return %c0_i32, %arg1 : i32, i32
  }
  func.func @transform_3(%arg0: i32, %arg1: i32) -> (i32, i32) {
    %c0_i32 = arith.constant 0 : i32
    %c0_i32_0 = arith.constant 0 : i32
    return %arg1, %c0_i32 : i32, i32
  }
  func.func @transform_4(%arg0: i32, %arg1: i32) -> (i32, i32) {
    %c0_i32 = arith.constant 0 : i32
    %c0_i32_0 = arith.constant 0 : i32
    %c0_i32_1 = arith.constant 0 : i32
    return %c0_i32, %c0_i32_0 : i32, i32
  }
  func.func @transform_5(%arg0: i32, %arg1: i32) -> (i32, i32) {
    %c0_i32 = arith.constant 0 : i32
    %c0_i32_0 = arith.constant 0 : i32
    return %arg0, %c0_i32 : i32, i32
  }
}

</mosaic_0001>

<bundles_post_ra>
// kernel: _ffn_2d.1
= control target key start
LH: loop header
LB: loop body
LE: loop exit
PB: predicated region body
PF: predicated region fallthrough
CT: control target
= control target key end

     0   :  { %s358_s0 = inlined_call_operand.vmem [shape: f32[16,128], index: 0, kind: input, shape index: {}]   ;;  %s359_s1 = inlined_call_operand.vmem [shape: f32[128,128], index: 1, kind: input, shape index: {}]   ;;  %s360_s2 = inlined_call_operand.vmem [shape: f32[1,128], index: 2, kind: input, shape index: {}]   ;;  %s361_s3 = inlined_call_operand.vmem [shape: f32[128,128], index: 3, kind: input, shape index: {}]   ;;  %s362_s4 = inlined_call_operand.vmem [shape: f32[1,128], index: 4, kind: input, shape index: {}]   ;;  %s363_s5 = inlined_call_operand.hbm [shape: f32[16,128], index: 5, kind: output, shape index: {}]  }
   0x1   :  { %v44_v0 = vld [vmem:[%s359_s1 + $0x78] sm:$0xff]  ;;  %v43_v1 = vld [vmem:[%s359_s1 + $0x70] sm:$0xff]  ;;  %v42_v2 = vld [vmem:[%s359_s1 + $0x68] sm:$0xff] }
   0x2   :  { %150 = vmatpush.msra.mxu2 %v44_v0  ;;  %49 = vmatpush.msra.mxu0 %v44_v0  ;;  %v41_v3 = vld [vmem:[%s359_s1 + $0x60] sm:$0xff]  ;;  %v40_v4 = vld [vmem:[%s359_s1 + $0x58] sm:$0xff]  ;;  %v90_v6 = vld [vmem:[%s361_s3 + $0x70] sm:$0xff] }
   0x3   :  { %v91_v5 = vld [vmem:[%s361_s3 + $0x78] sm:$0xff]  ;;  %v39_v7 = vld [vmem:[%s359_s1 + $0x50] sm:$0xff]  ;;  %v89_v8 = vld [vmem:[%s361_s3 + $0x68] sm:$0xff] }
   0x4   :  { %151 = vmatpush.msra.mxu2 %v43_v1  ;;  %50 = vmatpush.msra.mxu0 %v43_v1  ;;  %v38_v9 = vld [vmem:[%s359_s1 + $0x48] sm:$0xff]  ;;  %v88_v10 = vld [vmem:[%s361_s3 + $0x60] sm:$0xff] }
   0x5   :  { %166 = vmatpush.msra.mxu3 %v91_v5  ;;  %92 = vmatpush.msra.mxu1 %v91_v5 }
   0x6   :  { %152 = vmatpush.msra.mxu2 %v42_v2  ;;  %51 = vmatpush.msra.mxu0 %v42_v2 }
   0x7   :  { %167 = vmatpush.msra.mxu3 %v90_v6  ;;  %93 = vmatpush.msra.mxu1 %v90_v6 }
   0x8   :  { %153 = vmatpush.msra.mxu2 %v41_v3  ;;  %52 = vmatpush.msra.mxu0 %v41_v3 }
   0xa   :  { %154 = vmatpush.msra.mxu2 %v40_v4  ;;  %53 = vmatpush.msra.mxu0 %v40_v4 }
   0xc   :  { %155 = vmatpush.msra.mxu2 %v39_v7  ;;  %54 = vmatpush.msra.mxu0 %v39_v7 }
   0xd   :  { %10 = vsyncpa [#allocation3], 0  ;;  %v37_v11 = vld [vmem:[%s359_s1 + $0x40] sm:$0xff]  ;;  %168 = vmatpush.msra.mxu3 %v89_v8  ;;  %94 = vmatpush.msra.mxu1 %v89_v8  ;;  %v87_v12 = vld [vmem:[%s361_s3 + $0x58] sm:$0xff]  ;;  %s215_s16 = smov 128   ;;  %s216_s17 = smov 8  }
   0xe   :  { %156 = vmatpush.msra.mxu2 %v38_v9  ;;  %55 = vmatpush.msra.mxu0 %v38_v9  ;;  %v36_v13 = vld [vmem:[%s359_s1 + $0x38] sm:$0xff]  ;;  %v86_v14 = vld [vmem:[%s361_s3 + $0x50] sm:$0xff]  ;;  %v85_v16 = vld [vmem:[%s361_s3 + $0x48] sm:$0xff] }
   0xf   :  { %169 = vmatpush.msra.mxu3 %v88_v10  ;;  %95 = vmatpush.msra.mxu1 %v88_v10  ;;  %v35_v15 = vld [vmem:[%s359_s1 + $0x30] sm:$0xff]  ;;  %v34_v17 = vld [vmem:[%s359_s1 + $0x28] sm:$0xff]  ;;  %v84_v18 = vld [vmem:[%s361_s3 + $0x40] sm:$0xff] }
  0x10   :  { %157 = vmatpush.msra.mxu2 %v37_v11  ;;  %56 = vmatpush.msra.mxu0 %v37_v11  ;;  %v33_v19 = vld [vmem:[%s359_s1 + $0x20] sm:$0xff]  ;;  %v83_v20 = vld [vmem:[%s361_s3 + $0x38] sm:$0xff]  ;;  %v82_v22 = vld [vmem:[%s361_s3 + $0x30] sm:$0xff] }
  0x11   :  { %170 = vmatpush.msra.mxu3 %v87_v12  ;;  %96 = vmatpush.msra.mxu1 %v87_v12  ;;  %v32_v21 = vld [vmem:[%s359_s1 + $0x18] sm:$0xff]  ;;  %v31_v23 = vld [vmem:[%s359_s1 + $0x10] sm:$0xff]  ;;  %v81_v24 = vld [vmem:[%s361_s3 + $0x28] sm:$0xff] }
  0x12   :  { %158 = vmatpush.msra.mxu2 %v36_v13  ;;  %57 = vmatpush.msra.mxu0 %v36_v13  ;;  %v30_v25 = vld [vmem:[%s359_s1 + $0x8] sm:$0xff]  ;;  %v80_v26 = vld [vmem:[%s361_s3 + $0x20] sm:$0xff]  ;;  %v79_v30 = vld [vmem:[%s361_s3 + $0x18] sm:$0xff] }
  0x13   :  { %171 = vmatpush.msra.mxu3 %v86_v14  ;;  %97 = vmatpush.msra.mxu1 %v86_v14  ;;  %v29_v27 = vld [vmem:[%s359_s1] sm:$0xff]  ;;  %v28_v28 = vld [vmem:[%s358_s0 + $0x8] sm:$0xff]  ;;  %v78_v31 = vld [vmem:[%s361_s3 + $0x10] sm:$0xff] }
  0x14   :  { %159 = vmatpush.msra.mxu2 %v35_v15  ;;  %58 = vmatpush.msra.mxu0 %v35_v15  ;;  %v27_v29 = vld [vmem:[%s358_s0] sm:$0xff]  ;;  %v77_v32 = vld [vmem:[%s361_s3 + $0x8] sm:$0xff] }
  0x15   :  { %172 = vmatpush.msra.mxu3 %v85_v16  ;;  %98 = vmatpush.msra.mxu1 %v85_v16  ;;  %v76_v33 = vld [vmem:[%s361_s3] sm:$0xff]  ;;  %s214_s3 = smov [#allocation2]  }
  0x16   :  { %160 = vmatpush.msra.mxu2 %v34_v17  ;;  %59 = vmatpush.msra.mxu0 %v34_v17  ;;  %v186_v34 = vld [vmem:[%s360_s2] ss:$0 sm:$0xff]  ;;  %s136_s13 = sshll.u32 %s214_s3, 4  ;;  %s138_s2 = sshll.u32 %s363_s5, 4  ;;  %s137_s13 = int_to_ptr.vmem [resolvable:$true] %s136_s13  ;;  %s139_s2 = int_to_ptr.hbm [resolvable:$true] %s138_s2 }
  0x17   :  { %173 = vmatpush.msra.mxu3 %v84_v18  ;;  %99 = vmatpush.msra.mxu1 %v84_v18  ;;  %v187_v41 = vld [vmem:[%s362_s4] ss:$0 sm:$0xff] }
  0x18   :  { %161 = vmatpush.msra.mxu2 %v33_v19  ;;  %60 = vmatpush.msra.mxu0 %v33_v19 }
  0x19   :  { %174 = vmatpush.msra.mxu3 %v83_v20  ;;  %100 = vmatpush.msra.mxu1 %v83_v20 }
  0x1a   :  { %162 = vmatpush.msra.mxu2 %v32_v21  ;;  %61 = vmatpush.msra.mxu0 %v32_v21 }
  0x1b   :  { %175 = vmatpush.msra.mxu3 %v82_v22  ;;  %101 = vmatpush.msra.mxu1 %v82_v22 }
  0x1c   :  { %163 = vmatpush.msra.mxu2 %v31_v23  ;;  %62 = vmatpush.msra.mxu0 %v31_v23 }
  0x1d   :  { %176 = vmatpush.msra.mxu3 %v81_v24  ;;  %102 = vmatpush.msra.mxu1 %v81_v24 }
  0x1e   :  { %164 = vmatpush.msra.mxu2 %v30_v25  ;;  %63 = vmatpush.msra.mxu0 %v30_v25 }
  0x1f   :  { %177 = vmatpush.msra.mxu3 %v80_v26  ;;  %103 = vmatpush.msra.mxu1 %v80_v26 }
  0x20   :  { %165 = vmatpush.msra.mxu2 %v29_v27  ;;  %64 = vmatpush.msra.mxu0 %v29_v27 }
  0x21   :  { %68 = vmatmul.f32.vlgmr.msra.gmra.mxu2 %v28_v28  ;;  %65 = vmatmul.f32.vlgmr.msra.gmra.mxu0 %v27_v29 }
  0x22   :  { %178 = vmatpush.msra.mxu3 %v79_v30  ;;  %104 = vmatpush.msra.mxu1 %v79_v30 }
  0x24   :  { %179 = vmatpush.msra.mxu3 %v78_v31  ;;  %105 = vmatpush.msra.mxu1 %v78_v31 }
  0x26   :  { %180 = vmatpush.msra.mxu3 %v77_v32  ;;  %106 = vmatpush.msra.mxu1 %v77_v32 }
  0x28   :  { %181 = vmatpush.msra.mxu3 %v76_v33  ;;  %107 = vmatpush.msra.mxu1 %v76_v33 }
  0x9e   :  { %v66_v35 = vpop.f32.mrf.mxu0 }
  0x9f   :  { %v67_v36 = vadd.f32 %v186_v34, %v66_v35 }
  0xa1   :  { %v72_v37 = vmax.f32 %v67_v36, 0.0 }
  0xa3   :  { %108 = vmatmul.f32.vlgmr.msra.gmra.mxu1 %v72_v37 }
  0xa4   :  { %v69_v38 = vpop.f32.mrf.mxu2 }
  0xa5   :  { %v70_v39 = vadd.f32 %v186_v34, %v69_v38 }
  0xa7   :  { %v73_v40 = vmax.f32 %v70_v39, 0.0 }
  0xa9   :  { %111 = vmatmul.f32.vlgmr.msra.gmra.mxu3 %v73_v40 }
 0x120   :  { %v109_v42 = vpop.f32.mrf.mxu1 }
 0x121   :  { %v128_v43 = vadd.f32 %v187_v41, %v109_v42 }
 0x123   :  { %130 = vst [vmem:[#allocation2] sm:$0xff] %v128_v43 }
 0x12c   :  { %v112_v44 = vpop.f32.mrf.mxu3 }
 0x12d   :  { %v129_v45 = vadd.f32 %v187_v41, %v112_v44 }
 0x12f   :  { %131 = vst [vmem:[#allocation2 + $0x8] sm:$0xff] %v129_v45 }
 0x130   :  { %144 = dma.vmem_to_hbm [thread:$0]  %s137_s13, 256, %s139_s2, [#allocation3], %s215_s16, %s215_s16, %s216_s17  }
 0x131   :  { %212 = dma.done.wait [#allocation3], 256  }
 0x132   :  { %213 = vsyncadd [#allocation3], 4294967040 }
 0x133   :  { %149 = vsyncpa [#allocation3], 1 }

</bundles_post_ra>
